<compile_context>
chip_gen: v7x
topology: tpu7x:2x2x1
jax: 0.10.0
libtpu: 0.0.40
codegen_flags: <defaults>
</compile_context>

<pallas_src>
import jax
import jax.numpy as jnp
from jax import lax
from jax.experimental import pallas as pl
from jax.experimental.pallas import tpu as pltpu


# ----------------------------------------------------------------- helpers --
def _round_up(n, m):
    return ((n + m - 1) // m) * m


def _vmem_limit_bytes():
    """Per-generation scoped-VMEM budget: half of physical, capped at 64 MiB."""
    default = 32 * 1024 * 1024
    try:
        cap = getattr(pltpu.get_tpu_info(), "vmem_capacity_bytes", None)
        if cap:
            return int(min(int(cap) // 2, 64 * 1024 * 1024))
    except Exception:
        pass
    return default


def _pick_seq_tile(n, cap=512):
    """Tile for a second-to-last block dim: multiple of 8, or the full dim."""
    if n <= cap:
        return n
    best = None
    t = 8
    while t <= cap:
        if n % t == 0:
            best = t
        t += 8
    return best if best is not None else n


def _cossim_tiling(bw, bytes_per_row):
    """(tile, padded_extent) for the cossim leading (window) axis.

    Keeps each input block <= ~8 MiB (so 2x double-buffered in+out stays well
    under the 32 MiB scoped default, v7x included) and never degenerates to a
    tiny tile or one giant unpipelined block at large BW.
    """
    cap = max(8, min(512, ((8 * 1024 * 1024) // max(bytes_per_row, 1)) // 8 * 8))
    if bw <= cap:
        return bw, bw                        # single block == full extent
    for t in range(cap, 7, -8):              # output sublane dim needs t % 8 == 0
        if bw % t == 0:
            return t, bw
    return cap, _round_up(bw, cap)           # no nice divisor -> pad


def _elu_plus_one(t):
    # elu(t) + 1 : t > 0 -> t + 1 ; t <= 0 -> exp(t) - 1 + 1 = exp(t)
    return jnp.where(t > 0, t + 1.0, jnp.exp(t))


# ----------------------------------------------------------------------------
# Kernel 1: per-window mean pooling + cosine similarity to the mean.
# x: [BW, N, C] -> out: [BW, N]   (gridded over BW tiles)
# ----------------------------------------------------------------------------
def _cossim_kernel(x_ref, o_ref):
    x = x_ref[...].astype(jnp.float32)                    # [TB, N, C]
    n = x.shape[1]
    avg = jnp.sum(x, axis=1, keepdims=True) * (1.0 / n)   # [TB, 1, C]
    dot = jnp.sum(avg * x, axis=-1)                       # [TB, N]
    na2 = jnp.sum(avg * avg, axis=-1)                     # [TB, 1]
    nx2 = jnp.sum(x * x, axis=-1)                         # [TB, N]
    eps = 1e-8
    # single EUP rsqrt; exact enough to keep top-k index parity with torch
    denom2 = jnp.maximum(na2 * nx2, eps * eps)
    o_ref[...] = dot * lax.rsqrt(denom2)


def cosine_sim_to_mean(x):
    bw, n, c = x.shape
    itemsize = jnp.dtype(x.dtype).itemsize
    tb, bwp = _cossim_tiling(bw, n * c * itemsize)
    if bwp != bw:
        x = jnp.pad(x, ((0, bwp - bw), (0, 0), (0, 0)))
    out = pl.pallas_call(
        _cossim_kernel,
        out_shape=jax.ShapeDtypeStruct((bwp, n), jnp.float32),
        grid=(bwp // tb,),
        in_specs=[pl.BlockSpec((tb, n, c), lambda i: (i, 0, 0))],
        out_specs=pl.BlockSpec((tb, n), lambda i: (i, 0)),
        compiler_params=pltpu.CompilerParams(
            dimension_semantics=("parallel",),
            vmem_limit_bytes=_vmem_limit_bytes()),
    )(x)
    return out[:bw] if bwp != bw else out


# ----------------------------------------------------------------------------
# Kernel 2: per-batch linear-attention K/V reductions.
# source [B, S, C] -> rhs [B, C, 2C] bf16 = concat([(K^T V)*mask, diag(Ksum)@mask])
# Grid (B, S_tiles): batch "parallel", S "arbitrary" (accumulator pattern).
# ----------------------------------------------------------------------------
def _kv_stats_kernel(s_ref, wkv_ref, mask_ref, rhs_ref, kv_acc, ksum_acc):
    si = pl.program_id(1)
    cdt = jnp.bfloat16

    @pl.when(si == 0)
    def _():
        kv_acc[...] = jnp.zeros_like(kv_acc)
        ksum_acc[...] = jnp.zeros_like(ksum_acc)

    src = s_ref[0].astype(jnp.float32)                    # [tS, C]
    c = src.shape[1]
    kv = jnp.dot(src.astype(cdt), wkv_ref[...],
                 preferred_element_type=jnp.float32)      # fused k|v  [tS, 2C]
    k = _elu_plus_one(kv[:, :c])                          # [tS, C] f32
    v = kv[:, c:]                                         # [tS, C] f32
    # NOTE: the reference's v /= S and the trailing *S cancel exactly -> dropped.
    kv_acc[...] += lax.dot_general(
        k.astype(cdt), v.astype(cdt), (((0,), (0,)), ((), ())),
        preferred_element_type=jnp.float32)               # K^T V  [C, C]
    ksum_acc[...] += jnp.sum(k, axis=0, keepdims=True)    # [1, C] f32

    @pl.when(si == pl.num_programs(1) - 1)
    def _():
        mask = mask_ref[...]                                  # [C, C] f32
        kvm = kv_acc[...] * mask                              # block-diag KV
        zcol = jnp.transpose(ksum_acc[...], (1, 0)) * mask    # diag(Ksum) @ mask
        rhs_ref[0] = jnp.concatenate([kvm, zcol], axis=1).astype(rhs_ref.dtype)


# ----------------------------------------------------------------------------
# Kernel 3: Q-side transformer math (q proj, attention, merge, LN, MLP, LN,
# residual).  x [B, L, C], rhs [B, C, 2C] -> out [B, L, C].
# Grid (B, L_tiles), both "parallel".
# ----------------------------------------------------------------------------
def _encoder_q_kernel(x_ref, rhs_ref, wq_ref, wm_ref, g1_ref, b1_ref,
                      w1a_ref, w1b_ref, w2_ref, g2_ref, b2_ref, o_ref):
    eps = 1e-6      # LinearAttention eps
    ln_eps = 1e-5   # nn.LayerNorm default eps
    cdt = jnp.bfloat16

    x = x_ref[0].astype(jnp.float32)                      # [tL, C]
    c = x.shape[1]

    q = jnp.dot(x.astype(cdt), wq_ref[...],
                preferred_element_type=jnp.float32)       # [tL, C]
    Q = _elu_plus_one(q)

    # One fused [tL,C] @ [C,2C] matmul: attention numerator and per-head
    # normalizer (head mask + Ksum already folded into rhs by kernel 2).
    # TODO(synk): Zden via bf16 rhs trades ~1e-3 rel precision for the fusion.
    r = jnp.dot(Q.astype(cdt), rhs_ref[0],
                preferred_element_type=jnp.float32)       # [tL, 2C]
    num = r[:, :c]
    zden = r[:, c:]
    msg = num * pl.reciprocal(zden + eps, approx=True)    # EUP

    # merge linear (bias=False)
    msg = jnp.dot(msg.astype(cdt), wm_ref[...],
                  preferred_element_type=jnp.float32)

    # LayerNorm 1
    mu = jnp.mean(msg, axis=-1, keepdims=True)
    var = jnp.mean((msg - mu) ** 2, axis=-1, keepdims=True)
    msg = (msg - mu) * lax.rsqrt(var + ln_eps) * g1_ref[...] + b1_ref[...]

    # MLP on concat([x, msg]) without the lane-axis concat:
    # h1 = [x, msg] @ w1 == x @ w1[:C] + msg @ w1[C:]
    h1 = (jnp.dot(x.astype(cdt), w1a_ref[...],
                  preferred_element_type=jnp.float32) +
          jnp.dot(msg.astype(cdt), w1b_ref[...],
                  preferred_element_type=jnp.float32))    # [tL, 2C]
    h1 = jnp.maximum(h1, 0.0)
    msg = jnp.dot(h1.astype(cdt), w2_ref[...],
                  preferred_element_type=jnp.float32)     # [tL, C]

    # LayerNorm 2
    mu = jnp.mean(msg, axis=-1, keepdims=True)
    var = jnp.mean((msg - mu) ** 2, axis=-1, keepdims=True)
    msg = (msg - mu) * lax.rsqrt(var + ln_eps) * g2_ref[...] + b2_ref[...]

    o_ref[0] = (x + msg).astype(o_ref.dtype)


def encoder_layer(x, source, params):
    B, L, C = x.shape
    S = source.shape[1]
    nhead = params["nhead"]
    assert C % nhead == 0, "embed_dim must be divisible by nhead"
    cdt = jnp.bfloat16

    # Host-side weight prep: fuse k|v, split mlp w1, cast MXU operands to bf16,
    # precompute the block-diagonal head mask.
    wq = params["wq"].astype(cdt)
    wkv = jnp.concatenate([params["wk"], params["wv"]], axis=1).astype(cdt)
    wm = params["wm"].astype(cdt)
    w1a = params["w1"][:C].astype(cdt)      # [C, 2C]
    w1b = params["w1"][C:].astype(cdt)      # [C, 2C]
    w2 = params["w2"].astype(cdt)           # [2C, C]
    d = C // nhead
    hid = jnp.arange(C, dtype=jnp.int32) // d
    head_mask = (hid[:, None] == hid[None, :]).astype(jnp.float32)   # [C, C]

    vmem = _vmem_limit_bytes()

    def pinned(shape):
        nd = len(shape)
        # constant index_map: same block every grid step -> not re-DMA'd.
        return pl.BlockSpec(shape, lambda *_, _nd=nd: (0,) * _nd)

    # ---- stage 1: per-batch K/V reductions over S -------------------------
    tS = _pick_seq_tile(S)
    rhs = pl.pallas_call(
        _kv_stats_kernel,
        out_shape=jax.ShapeDtypeStruct((B, C, 2 * C), cdt),
        grid=(B, S // tS),
        in_specs=[
            pl.BlockSpec((1, tS, C), lambda b, s: (b, s, 0)),   # source
            pinned((C, 2 * C)),                                 # wk|wv fused
            pinned((C, C)),                                     # head mask
        ],
        out_specs=pl.BlockSpec((1, C, 2 * C), lambda b, s: (b, 0, 0)),
        scratch_shapes=[pltpu.VMEM((C, C), jnp.float32),
                        pltpu.VMEM((1, C), jnp.float32)],
        compiler_params=pltpu.CompilerParams(
            dimension_semantics=("parallel", "arbitrary"),
            vmem_limit_bytes=vmem),
    )(source, wkv, head_mask)

    # ---- stage 2: Q-side math, tiled over L --------------------------------
    tL = _pick_seq_tile(L)
    return pl.pallas_call(
        _encoder_q_kernel,
        out_shape=jax.ShapeDtypeStruct((B, L, C), x.dtype),
        grid=(B, L // tL),
        in_specs=[
            pl.BlockSpec((1, tL, C), lambda b, l: (b, l, 0)),     # x tile
            pl.BlockSpec((1, C, 2 * C), lambda b, l: (b, 0, 0)),  # per-batch rhs
            pinned((C, C)),          # wq
            pinned((C, C)),          # merge
            pinned((1, C)),          # ln1 gamma
            pinned((1, C)),          # ln1 beta
            pinned((C, 2 * C)),      # mlp w1 top half
            pinned((C, 2 * C)),      # mlp w1 bottom half
            pinned((2 * C, C)),      # mlp w2
            pinned((1, C)),          # ln2 gamma
            pinned((1, C)),          # ln2 beta
        ],
        out_specs=pl.BlockSpec((1, tL, C), lambda b, l: (b, l, 0)),
        compiler_params=pltpu.CompilerParams(
            dimension_semantics=("parallel", "parallel"),
            vmem_limit_bytes=vmem),
    )(x, rhs, wq, wm, params["g1"], params["b1"], w1a, w1b, w2,
      params["g2"], params["b2"])


# ----------------------------------------------------------------------------
# Plain-JAX glue (data movement only): topk / gather / scatter_add / reverse.
# ----------------------------------------------------------------------------
def window_reverse_nchw(windows, window_size, img_size):
    H, W = img_size
    C = windows.shape[-1]
    windows = jnp.transpose(windows, (0, 2, 1)).reshape(
        -1, C, window_size[0], window_size[1])
    x = windows.reshape(-1, H // window_size[0], W // window_size[1],
                        C, window_size[0], window_size[1])
    x = jnp.transpose(x, (0, 3, 1, 4, 2, 5)).reshape(-1, C, H, W)
    return x


def _topk_gather(win, topk):
    """Returns (topk_tokens [BW, K, C], indices [BW, K])."""
    cos = cosine_sim_to_mean(win)                             # [BW, N]
    _, idx = lax.top_k(cos, topk)                             # [BW, K]
    tok = jnp.take_along_axis(win, idx[:, :, None], axis=1)   # [BW, K, C]
    return tok, idx


def win_topk_attention(x_win_attn, s_win_attn, attn_name, params, b, h, w):
    ws = params["window_size"]
    topk = params["topk"]
    C = params["embed_dim"]
    nums_window = (h // ws) * (w // ws)
    bw = b * nums_window

    if attn_name == "self":
        tok1, idx1 = _topk_gather(x_win_attn, topk)
        tok1 = tok1.reshape(b, nums_window * topk, C)
        out = encoder_layer(tok1, tok1, params)
    elif attn_name == "cross":
        tok1, idx1 = _topk_gather(x_win_attn, topk)
        tok1 = tok1.reshape(b, nums_window * topk, C)
        tok2, _ = _topk_gather(s_win_attn, topk)
        tok2 = tok2.reshape(b, nums_window * topk, C)
        out = encoder_layer(tok1, tok2, params)
    else:
        raise ValueError(attn_name)

    out = out.reshape(bw, topk, C)
    row = jnp.arange(bw)[:, None]                             # [BW, 1]
    # scatter_add_ along dim=1 into a copy of x_win_attn
    combined = x_win_attn.at[row, idx1].add(out)
    return window_reverse_nchw(combined, (ws, ws), (h, w))


# ----------------------------------------------------------------------------
# Deterministic parameter init (shapes follow EncoderLayer.__init__).
# Weights stored as [in, out] so the kernel applies x @ W (== torch x @ W.T).
# ----------------------------------------------------------------------------
def init_params(key, embed_dim, nhead, window_size, topk):
    C = embed_dim
    assert C % nhead == 0
    ks = jax.random.split(key, 6)
    s1 = 1.0 / jnp.sqrt(jnp.float32(C))
    s2 = 1.0 / jnp.sqrt(jnp.float32(2 * C))
    u = jax.random.uniform
    return {
        "nhead": nhead,
        "embed_dim": C,
        "window_size": window_size,
        "topk": topk,
        "wq": u(ks[0], (C, C), jnp.float32, -s1, s1),
        "wk": u(ks[1], (C, C), jnp.float32, -s1, s1),
        "wv": u(ks[2], (C, C), jnp.float32, -s1, s1),
        "wm": u(ks[3], (C, C), jnp.float32, -s1, s1),
        "g1": jnp.ones((1, C), jnp.float32),
        "b1": jnp.zeros((1, C), jnp.float32),
        "w1": u(ks[4], (2 * C, 2 * C), jnp.float32, -s2, s2),
        "w2": u(ks[5], (2 * C, C), jnp.float32, -s2, s2),
        "g2": jnp.ones((1, C), jnp.float32),
        "b2": jnp.zeros((1, C), jnp.float32),
    }


if __name__ == "__main__":
    # Small, consistent shapes:
    B = 2
    EMBED_DIM = 32
    NHEAD = 4
    WIN = 4
    TOPK = 4
    H = W = 8
    NUM_WIN = (H // WIN) * (W // WIN)         # 4
    N_TOK = WIN * WIN                         # 16
    BW = B * NUM_WIN                          # 8

    key = jax.random.PRNGKey(0)
    kx, ks, kp = jax.random.split(key, 3)
    x_win = jax.random.normal(kx, (BW, N_TOK, EMBED_DIM), jnp.float32)
    s_win = jax.random.normal(ks, (BW, N_TOK, EMBED_DIM), jnp.float32)

    params = init_params(kp, EMBED_DIM, NHEAD, WIN, TOPK)

    out_cross = win_topk_attention(x_win, s_win, "cross", params, B, H, W)
    out_self = win_topk_attention(x_win, s_win, "self", params, B, H, W)
    jax.block_until_ready(out_cross)
    jax.block_until_ready(out_self)

    assert out_cross.shape == (B, EMBED_DIM, H, W), out_cross.shape
    assert out_self.shape == (B, EMBED_DIM, H, W), out_self.shape
    assert jnp.all(jnp.isfinite(out_cross)) and jnp.all(jnp.isfinite(out_self))
    print("KERNEL_OK")
</pallas_src>

<mosaic_0001>
module attributes {stable_mosaic.version = 11 : i64} {
  func.func @_cossim_kernel(%arg0: i32, %arg1: memref<8x16x32xf32, #tpu.memory_space<vmem>>, %arg2: memref<8x16xf32, #tpu.memory_space<vmem>>) attributes {dimension_semantics = [#tpu.dimension_semantics<parallel>], iteration_bounds = array<i64: 1>, scalar_prefetch = 0 : i64, scratch_operands = 0 : i64, tpu.core_type = #tpu.core_type<tc>, window_params = [{transform_indices = @transform_0, window_bounds = array<i64: 8, 16, 32>}, {transform_indices = @transform_1, window_bounds = array<i64: 8, 16>}]} {
    %c0 = arith.constant 0 : index
    %c0_0 = arith.constant 0 : index
    %c0_1 = arith.constant 0 : index
    %0 = vector.load %arg1[%c0, %c0_0, %c0_1] : memref<8x16x32xf32, #tpu.memory_space<vmem>>, vector<8x16x32xf32>
    %cst = arith.constant dense<0.000000e+00> : vector<8x32xf32>
    %1 = vector.multi_reduction <add>, %0, %cst [1] : vector<8x16x32xf32> to vector<8x32xf32>
    %2 = vector.shape_cast %1 : vector<8x32xf32> to vector<8x1x32xf32>
    %cst_2 = arith.constant 6.250000e-02 : f32
    %3 = vector.broadcast %cst_2 : f32 to vector<8x1x32xf32>
    %4 = arith.mulf %2, %3 : vector<8x1x32xf32>
    %5 = vector.broadcast %4 : vector<8x1x32xf32> to vector<8x16x32xf32>
    %6 = arith.mulf %5, %0 : vector<8x16x32xf32>
    %cst_3 = arith.constant dense<0.000000e+00> : vector<8x16xf32>
    %7 = vector.multi_reduction <add>, %6, %cst_3 [2] : vector<8x16x32xf32> to vector<8x16xf32>
    %8 = arith.mulf %4, %4 : vector<8x1x32xf32>
    %cst_4 = arith.constant dense<0.000000e+00> : vector<8x1xf32>
    %9 = vector.multi_reduction <add>, %8, %cst_4 [2] : vector<8x1x32xf32> to vector<8x1xf32>
    %10 = arith.mulf %0, %0 : vector<8x16x32xf32>
    %cst_5 = arith.constant dense<0.000000e+00> : vector<8x16xf32>
    %11 = vector.multi_reduction <add>, %10, %cst_5 [2] : vector<8x16x32xf32> to vector<8x16xf32>
    %12 = vector.broadcast %9 : vector<8x1xf32> to vector<8x16xf32>
    %13 = arith.mulf %12, %11 : vector<8x16xf32>
    %cst_6 = arith.constant 1.000000e-16 : f32
    %14 = vector.broadcast %cst_6 : f32 to vector<8x16xf32>
    %15 = arith.maximumf %13, %14 : vector<8x16xf32>
    %16 = math.rsqrt %15 : vector<8x16xf32>
    %17 = arith.mulf %7, %16 : vector<8x16xf32>
    %c0_7 = arith.constant 0 : index
    %c0_8 = arith.constant 0 : index
    %18 = vector.load %arg2[%c0_7, %c0_8] : memref<8x16xf32, #tpu.memory_space<vmem>>, vector<8x16xf32>
    tpu.vector_store %arg2[%c0_7, %c0_8], %17 {strides = array<i32>} : memref<8x16xf32, #tpu.memory_space<vmem>>, vector<8x16xf32>,
    return
  }
  func.func @transform_0(%arg0: i32) -> (i32, i32, i32) {
    %c0_i32 = arith.constant 0 : i32
    %c0_i32_0 = arith.constant 0 : i32
    %c0_i32_1 = arith.constant 0 : i32
    return %arg0, %c0_i32, %c0_i32_0 : i32, i32, i32
  }
  func.func @transform_1(%arg0: i32) -> (i32, i32) {
    %c0_i32 = arith.constant 0 : i32
    %c0_i32_0 = arith.constant 0 : i32
    return %arg0, %c0_i32 : i32, i32
  }
}

</mosaic_0001>

<bundles_post_ra>
// kernel: tpu_custom_call.1
= control target key start
LH: loop header
LB: loop body
LE: loop exit
PB: predicated region body
PF: predicated region fallthrough
CT: control target
= control target key end

     0   :  { %6 = vsyncpa [#allocation3], 0  ;;  %s810_s0 = inlined_call_operand.hbm [shape: f32[8,16,32], index: 0, kind: input, shape index: {}]   ;;  %s811_s1 = inlined_call_operand.hbm [shape: f32[8,16], index: 1, kind: output, shape index: {}]  }
   0x1   :  { %7 = vsyncpa [#allocation4], 0  ;;  %s552_s6 = smov [#allocation2]   ;;  %s504_s10 = scalar_lea.hbm %s810_s0, 2048 }
   0x2   :  { %s13_s7 = sshll.u32 %s552_s6, 4  ;;  %p505_p0 = scmp.ne.s32.totalorder %s810_s0, %s504_s10  ;;  %s14_s7 = int_to_ptr.vmem [resolvable:$true] %s13_s7 }
   0x3   :  { %p508_p1 = scmp.lt.u32.totalorder %s504_s10, %s810_s0 }
   0x5   :  { %p510_p2 = pnand %p508_p1, %p505_p0 }
   0x7   :  { %513 = shalt.err (!%p510_p2)
}
   0x8   :  { %s514_s15 = scalar_lea.vmem %s14_s7, 2048  ;;  %p519_p4 = scmp.lt.s32.totalorder %s14_s7, %s14_s7 }
   0x9   :  { %p515_p3 = scmp.ne.s32.totalorder %s14_s7, %s514_s15  ;;  %p520_p5 = scmp.lt.s32.totalorder %s514_s15, %s514_s15 }
   0xb   :  { %p521_p6 = por %p520_p5, %p519_p4 }
   0xd   :  { %p522_p7 = pnand %p521_p6, %p515_p3 }
   0xf   :  { %525 = shalt.err (!%p522_p7)
}
  0x10   :  { %s553_s16 = smov 128   ;;  %s554_s17 = smov 8  }
  0x11   :  { %19 = dma.hbm_to_vmem [thread:$0]  %s810_s0, 2048, %s14_s7, [#allocation3], %s553_s16, %s553_s16, %s554_s17  }
  0x12   :  { %548 = dma.done.wait [#allocation3], 2048  }
  0x13   :  { %549 = vsyncadd [#allocation3], 4294965248  ;;  %vm39_vm0 = vcmask 261120   ;;  %v578_v0 = vld [vmem:[#allocation2] sm:$0xff]  ;;  %v580_v1 = vld [vmem:[#allocation2 + $0x10] sm:$0xff]  ;;  %vm371_vm1 = vcmask 130112  }
  0x14   :  { %v582_v2 = vld [vmem:[#allocation2 + $0x8] sm:$0xff]  ;;  %v216_v3 = vmul.f32 %v578_v0, %v578_v0  ;;  %v40_v4 = vsel %vm39_vm0, %v578_v0, 0.0  ;;  %v218_v5 = vmul.f32 %v580_v1, %v580_v1  ;;  %v49_v6 = vsel %vm39_vm0, %v580_v1, 0.0  ;;  %v594_v8 = vld [vmem:[#allocation2 + $0x18] sm:$0xff]  ;;  %v604_v13 = vld [vmem:[#allocation2 + $0x20] sm:$0xff]  ;;  %s555_s0 = smov [#allocation5]  }
  0x15   :  { %v592_v7 = vld [vmem:[#allocation2 + $0x28] sm:$0xff]  ;;  %v41_v9 = vsel %vm39_vm0, %v582_v2, 0.0  ;;  %v217_v10 = vmul.f32 %v582_v2, %v582_v2  ;;  %v50_v17 = vsel %vm39_vm0, %v594_v8, 0.0  ;;  %v610_v18 = vld [vmem:[#allocation2 + $0x30] sm:$0xff]  ;;  %v219_v24 = vmul.f32 %v594_v8, %v594_v8  ;;  %v622_v27 = vld [vmem:[#allocation2 + $0x38] sm:$0xff]  ;;  %s459_s20 = sshll.u32 %s555_s0, 4  ;;  %s460_s20 = int_to_ptr.vmem [resolvable:$true] %s459_s20 }
  0x16   :  { %v59_v11 = vsel %vm39_vm0, %v592_v7, 0.0  ;;  %v221_v12 = vmul.f32 %v592_v7, %v592_v7  ;;  %v232_v14 = vsel %vm39_vm0, %v216_v3, 0.0  ;;  %v238_v15 = vsel %vm39_vm0, %v218_v5, 0.0  ;;  %v614_v22 = vld [vmem:[#allocation2 + $0x48] sm:$0xff]  ;;  %v630_v34 = vld [vmem:[#allocation2 + $0x40] sm:$0xff]  ;;  %v638_v43 = vld [vmem:[#allocation2 + $0x50] sm:$0xff]  ;;  %p531_p9 = scmp.lt.s32.totalorder %s460_s20, %s460_s20 }
  0x17   :  { %v42_v16 = vadd.f32 %v41_v9, %v40_v4  ;;  %233 = vadd.xlane.f32.xlu1 %v232_v14  ;;  %239 = vadd.xlane.f32.xlu0 %v238_v15  ;;  %v235_v19 = vsel %vm39_vm0, %v217_v10, 0.0  ;;  %v51_v21 = vadd.f32 %v50_v17, %v49_v6  ;;  %v222_v25 = vmul.f32 %v610_v18, %v610_v18  ;;  %v643_v48 = vld [vmem:[#allocation2 + $0x58] sm:$0xff]  ;;  %v652_v6 = vld [vmem:[#allocation2 + $0x60] sm:$0xff]  ;;  %v656_v14 = vld [vmem:[#allocation2 + $0x68] sm:$0xff]  ;;  %s526_s21 = scalar_lea.vmem %s460_s20, 128 }
  0x18   :  { %v247_v20 = vsel %vm39_vm0, %v221_v12, 0.0  ;;  %v58_v26 = vsel %vm39_vm0, %v604_v13, 0.0  ;;  %v67_v29 = vsel %vm39_vm0, %v610_v18, 0.0  ;;  %v220_v31 = vmul.f32 %v604_v13, %v604_v13  ;;  %p527_p8 = scmp.ne.s32.totalorder %s460_s20, %s526_s21  ;;  %p532_p10 = scmp.lt.s32.totalorder %s526_s21, %s526_s21 }
  0x19   :  { %v43_v23 = vrot.slane %v42_v16, 4  ;;  %v52_v28 = vrot.slane %v51_v21, 4  ;;  %v60_v30 = vadd.f32 %v59_v11, %v58_v26  ;;  %v225_v33 = vmul.f32 %v614_v22, %v614_v22 }
  0x1a   :  { %v77_v37 = vsel %vm39_vm0, %v614_v22, 0.0  ;;  %v68_v38 = vsel %vm39_vm0, %v622_v27, 0.0  ;;  %v241_v39 = vsel %vm39_vm0, %v219_v24, 0.0  ;;  %v250_v40 = vsel %vm39_vm0, %v222_v25, 0.0  ;;  %p533_p11 = por %p532_p10, %p531_p9 }
  0x1b   :  { %v44_v32 = vadd.f32 %v43_v23, %v42_v16  ;;  %236 = vadd.xlane.f32.xlu1 %v235_v19  ;;  %248 = vadd.xlane.f32.xlu0 %v247_v20  ;;  %v53_v35 = vadd.f32 %v52_v28, %v51_v21  ;;  %v61_v36 = vrot.slane %v60_v30, 4  ;;  %v69_v41 = vadd.f32 %v68_v38, %v67_v29 }
  0x1c   :  { %v244_v45 = vsel %vm39_vm0, %v220_v31, 0.0  ;;  %v76_v46 = vsel %vm39_vm0, %v630_v34, 0.0  ;;  %v259_v49 = vsel %vm39_vm0, %v225_v33, 0.0  ;;  %v223_v53 = vmul.f32 %v622_v27, %v622_v27  ;;  %p534_p12 = pnand %p533_p11, %p527_p8 }
  0x1d   :  { %v45_v42 = vrot.slane %v44_v32, 2  ;;  %v62_v44 = vadd.f32 %v61_v36, %v60_v30  ;;  %v54_v47 = vrot.slane %v53_v35, 2  ;;  %v70_v50 = vrot.slane %v69_v41, 4 }
  0x1e   :  { %v78_v52 = vadd.f32 %v77_v37, %v76_v46  ;;  %v85_v56 = vsel %vm39_vm0, %v638_v43, 0.0  ;;  %v86_v60 = vsel %vm39_vm0, %v643_v48, 0.0  ;;  %v224_v9 = vmul.f32 %v630_v34, %v630_v34 }
  0x1f   :  { %v46_v51 = vadd.f32 %v45_v42, %v44_v32  ;;  %242 = vadd.xlane.f32.xlu1 %v241_v39  ;;  %251 = vadd.xlane.f32.xlu0 %v250_v40  ;;  %v55_v54 = vadd.f32 %v54_v47, %v53_v35  ;;  %v63_v55 = vrot.slane %v62_v44, 2  ;;  %v71_v57 = vadd.f32 %v70_v50, %v69_v41  ;;  %v673_v35 = vld [vmem:[#allocation2 + $0x70] sm:$0xff]  ;;  %v677_v40 = vld [vmem:[#allocation2 + $0x78] sm:$0xff] }
  0x20   :  { %v79_v59 = vrot.slane %v78_v52, 4  ;;  %v87_v63 = vadd.f32 %v86_v60, %v85_v56  ;;  %v253_v15 = vsel %vm39_vm0, %v223_v53, 0.0  ;;  %v94_v24 = vsel %vm39_vm0, %v652_v6, 0.0 }
  0x21   :  { %v47_v58 = vrot.slane %v46_v51, 1  ;;  %v56_v61 = vrot.slane %v55_v54, 1  ;;  %v64_v62 = vadd.f32 %v63_v55, %v62_v44  ;;  %v72_v5 = vrot.slane %v71_v57, 2 }
  0x22   :  { %v80_v4 = vadd.f32 %v79_v59, %v78_v52  ;;  %v88_v12 = vrot.slane %v87_v63, 4  ;;  %v95_v29 = vsel %vm39_vm0, %v656_v14, 0.0  ;;  %v256_v37 = vsel %vm39_vm0, %v224_v9, 0.0 }
  0x23   :  { %v48_v3 = vadd.f32 %v47_v58, %v46_v51  ;;  %245 = vadd.xlane.f32.xlu1 %v244_v45  ;;  %260 = vadd.xlane.f32.xlu0 %v259_v49  ;;  %v57_v10 = vadd.f32 %v56_v61, %v55_v54  ;;  %v65_v11 = vrot.slane %v64_v62, 1  ;;  %v73_v17 = vadd.f32 %v72_v5, %v71_v57 }
  0x24   :  { %v81_v19 = vrot.slane %v80_v4, 2  ;;  %v89_v23 = vadd.f32 %v88_v12, %v87_v63  ;;  %v96_v33 = vadd.f32 %v95_v29, %v94_v24  ;;  %v103_v49 = vsel %vm39_vm0, %v673_v35, 0.0 }
  0x25   :  { %v659_v16 = vmul.f32 0.0625, %v48_v3  ;;  %v661_v20 = vmul.f32 0.0625, %v57_v10  ;;  %v66_v21 = vadd.f32 %v65_v11, %v64_v62  ;;  %v74_v26 = vrot.slane %v73_v17, 1 }
  0x26   :  { %v82_v28 = vadd.f32 %v81_v19, %v80_v4  ;;  %v90_v32 = vrot.slane %v89_v23, 2  ;;  %v97_v44 = vrot.slane %v96_v33, 4  ;;  %v104_v52 = vsel %vm39_vm0, %v677_v40, 0.0 }
  0x27   :  { %v184_v25 = vmul.f32 %v659_v16, %v659_v16  ;;  %254 = vadd.xlane.f32.xlu1 %v253_v15  ;;  %v185_v30 = vmul.f32 %v661_v20, %v661_v20  ;;  %v671_v31 = vmul.f32 0.0625, %v66_v21  ;;  %v75_v38 = vadd.f32 %v74_v26, %v73_v17 }
  0x28   :  { %v83_v39 = vrot.slane %v82_v28, 1  ;;  %v91_v42 = vadd.f32 %v90_v32, %v89_v23  ;;  %v98_v51 = vadd.f32 %v97_v44, %v96_v33  ;;  %v105_v55 = vadd.f32 %v104_v52, %v103_v49 }
  0x29   :  { %v192_v36 = vsel %vm39_vm0, %v184_v25, 0.0  ;;  %v195_v41 = vsel %vm39_vm0, %v185_v30, 0.0  ;;  %v680_v45 = vmul.f32 0.0625, %v75_v38  ;;  %v186_v46 = vmul.f32 %v671_v31, %v671_v31 }
  0x2a   :  { %193 = vadd.xlane.f32.xlu0 %v192_v36  ;;  %v84_v47 = vadd.f32 %v83_v39, %v82_v28  ;;  %v92_v50 = vrot.slane %v91_v42, 1  ;;  %v99_v57 = vrot.slane %v98_v51, 2  ;;  %v106_v61 = vrot.slane %v105_v55, 4 }
  0x2b   :  { %257 = vadd.xlane.f32.xlu1 %v256_v37  ;;  %v187_v53 = vmul.f32 %v680_v45, %v680_v45  ;;  %v198_v59 = vsel %vm39_vm0, %v186_v46, 0.0  ;;  %v227_v5 = vmul.f32 %v643_v48, %v643_v48  ;;  %v226_v11 = vmul.f32 %v638_v43, %v638_v43 }
  0x2c   :  { %v690_v54 = vmul.f32 0.0625, %v84_v47  ;;  %v93_v56 = vadd.f32 %v92_v50, %v91_v42  ;;  %v100_v63 = vadd.f32 %v99_v57, %v98_v51  ;;  %v107_v3 = vadd.f32 %v106_v61, %v105_v55 }
  0x2d   :  { %v201_v58 = vsel %vm39_vm0, %v187_v53, 0.0  ;;  %v265_v21 = vsel %vm39_vm0, %v227_v5, 0.0  ;;  %v228_v23 = vmul.f32 %v652_v6, %v652_v6  ;;  %v262_v25 = vsel %vm39_vm0, %v226_v11, 0.0 }
  0x2e   :  { %196 = vadd.xlane.f32.xlu0 %v195_v41  ;;  %v188_v60 = vmul.f32 %v690_v54, %v690_v54  ;;  %v696_v62 = vmul.f32 0.0625, %v93_v56  ;;  %v101_v9 = vrot.slane %v100_v63, 1  ;;  %v108_v12 = vrot.slane %v107_v3, 2 }
  0x2f   :  { %202 = vadd.xlane.f32.xlu1 %v201_v58  ;;  %v268_v30 = vsel %vm39_vm0, %v228_v23, 0.0  ;;  %v229_v36 = vmul.f32 %v656_v14, %v656_v14  ;;  %v231_v38 = vmul.f32 %v677_v40, %v677_v40  ;;  %v230_v42 = vmul.f32 %v673_v35, %v673_v35 }
  0x30   :  { %v189_v4 = vmul.f32 %v696_v62, %v696_v62  ;;  %v204_v10 = vsel %vm39_vm0, %v188_v60, 0.0  ;;  %v102_v17 = vadd.f32 %v101_v9, %v100_v63  ;;  %v109_v19 = vadd.f32 %v108_v12, %v107_v3 }
  0x31   :  { %v271_v41 = vsel %vm39_vm0, %v229_v36, 0.0  ;;  %v277_v44 = vsel %vm39_vm0, %v231_v38, 0.0  ;;  %v121_v46 = vmul.f32 %v659_v16, %v582_v2  ;;  %v274_v47 = vsel %vm39_vm0, %v230_v42, 0.0 }
  0x32   :  { %199 = vadd.xlane.f32.xlu0 %v198_v59  ;;  %v207_v15 = vsel %vm39_vm0, %v189_v4, 0.0  ;;  %v118_v24 = vmul.f32 0.0625, %v102_v17  ;;  %v110_v26 = vrot.slane %v109_v19, 1  ;;  %v120_v49 = vmul.f32 %v659_v16, %v578_v0 }
  0x33   :  { %208 = vadd.xlane.f32.xlu1 %v207_v15  ;;  %v139_v50 = vsel %vm39_vm0, %v121_v46, 0.0  ;;  %v123_v51 = vmul.f32 %v661_v20, %v594_v8  ;;  %v122_v53 = vmul.f32 %v661_v20, %v580_v1  ;;  %v125_v55 = vmul.f32 %v671_v31, %v592_v7 }
  0x34   :  { %v190_v28 = vmul.f32 %v118_v24, %v118_v24  ;;  %v111_v29 = vadd.f32 %v110_v26, %v109_v19  ;;  %v136_v52 = vsel %vm39_vm0, %v120_v49, 0.0  ;;  %v124_v16 = vmul.f32 %v671_v31, %v604_v13 }
  0x35   :  { %v145_v2 = vsel %vm39_vm0, %v123_v51, 0.0  ;;  %v142_v0 = vsel %vm39_vm0, %v122_v53, 0.0  ;;  %v151_v8 = vsel %vm39_vm0, %v125_v55, 0.0  ;;  %v127_v56 = vmul.f32 %v680_v45, %v622_v27 }
  0x36   :  { %205 = vadd.xlane.f32.xlu0 %v204_v10  ;;  %v210_v32 = vsel %vm39_vm0, %v190_v28, 0.0  ;;  %v119_v33 = vmul.f32 0.0625, %v111_v29  ;;  %v148_v1 = vsel %vm39_vm0, %v124_v16, 0.0  ;;  %v126_v20 = vmul.f32 %v680_v45, %v610_v18 }
  0x37   :  { %266 = vadd.xlane.f32.xlu1 %v265_v21  ;;  %v157_v7 = vsel %vm39_vm0, %v127_v56, 0.0  ;;  %v129_v57 = vmul.f32 %v690_v54, %v614_v22  ;;  %v128_v31 = vmul.f32 %v690_v54, %v630_v34  ;;  %v131_v58 = vmul.f32 %v696_v62, %v643_v48 }
  0x38   :  { %v191_v37 = vmul.f32 %v119_v33, %v119_v33  ;;  %v154_v13 = vsel %vm39_vm0, %v126_v20, 0.0  ;;  %v130_v45 = vmul.f32 %v696_v62, %v638_v43  ;;  %v133_v59 = vmul.f32 %v118_v24, %v656_v14 }
  0x39   :  { %v163_v27 = vsel %vm39_vm0, %v129_v57, 0.0  ;;  %v160_v18 = vsel %vm39_vm0, %v128_v31, 0.0  ;;  %v169_v22 = vsel %vm39_vm0, %v131_v58, 0.0  ;;  %v132_v54 = vmul.f32 %v118_v24, %v652_v6 }
  0x3a   :  { %263 = vadd.xlane.f32.xlu0 %v262_v25  ;;  %v213_v39 = vsel %vm39_vm0, %v191_v37, 0.0  ;;  %v166_v34 = vsel %vm39_vm0, %v130_v45, 0.0  ;;  %v175_v60 = vsel %vm39_vm0, %v133_v59, 0.0  ;;  %v135_v48 = vmul.f32 %v119_v33, %v677_v40 }
  0x3b   :  { %269 = vadd.xlane.f32.xlu1 %v268_v30  ;;  %v172_v61 = vsel %vm39_vm0, %v132_v54, 0.0  ;;  %v134_v43 = vmul.f32 %v119_v33, %v673_v35  ;;  %vm436_vm2 = vcmask 1041409   ;;  %vm438_vm3 = vcmask 1042434  }
  0x3c   :  { %v181_v62 = vsel %vm39_vm0, %v135_v48, 0.0  ;;  %vm440_vm4 = vcmask 1043459   ;;  %vm442_vm5 = vcmask 1044484   ;;  %vm444_vm6 = vcmask 1045509  }
  0x3d   :  { %v178_v14 = vsel %vm39_vm0, %v134_v43, 0.0  ;;  %vm446_vm7 = vcmask 1046534   ;;  %vm448_vm8 = vcmask 1047559   ;;  %vm451_vm9 = vcmask 130048  }
  0x3e   :  { %211 = vadd.xlane.f32.xlu0 %v210_v32 }
  0x3f   :  { %214 = vadd.xlane.f32.xlu1 %v213_v39 }
  0x42   :  { %272 = vadd.xlane.f32.xlu0 %v271_v41 }
  0x43   :  { %278 = vadd.xlane.f32.xlu1 %v277_v44 }
  0x46   :  { %275 = vadd.xlane.f32.xlu0 %v274_v47 }
  0x47   :  { %140 = vadd.xlane.f32.xlu1 %v139_v50 }
  0x4a   :  { %137 = vadd.xlane.f32.xlu0 %v136_v52 }
  0x4b   :  { %146 = vadd.xlane.f32.xlu1 %v145_v2 }
  0x4e   :  { %143 = vadd.xlane.f32.xlu0 %v142_v0 }
  0x4f   :  { %152 = vadd.xlane.f32.xlu1 %v151_v8 }
  0x52   :  { %149 = vadd.xlane.f32.xlu0 %v148_v1 }
  0x53   :  { %158 = vadd.xlane.f32.xlu1 %v157_v7 }
  0x56   :  { %155 = vadd.xlane.f32.xlu0 %v154_v13 }
  0x57   :  { %164 = vadd.xlane.f32.xlu1 %v163_v27 }
  0x5a   :  { %161 = vadd.xlane.f32.xlu0 %v160_v18  ;;  %v360_v18 = vlaneseq }
  0x5b   :  { %170 = vadd.xlane.f32.xlu1 %v169_v22 }
  0x5e   :  { %167 = vadd.xlane.f32.xlu0 %v166_v34 }
  0x5f   :  { %176 = vadd.xlane.f32.xlu1 %v175_v60 }
  0x62   :  { %173 = vadd.xlane.f32.xlu0 %v172_v61  ;;  %v361_v61 = vand.u32 127, %v360_v18 }
  0x63   :  { %182 = vadd.xlane.f32.xlu1 %v181_v62 }
  0x66   :  { %179 = vadd.xlane.f32.xlu0 %v178_v14 }
  0xa4   :  { %v234_v63 = vpop.xlane.xlu1 %233  ;;  %v240_v6 = vpop.xlane.xlu0 %239 }
  0xa8   :  { %v237_v3 = vpop.xlane.xlu1 %236  ;;  %v249_v4 = vpop.xlane.xlu0 %248 }
  0xac   :  { %v243_v5 = vpop.xlane.xlu1 %242  ;;  %v252_v9 = vpop.xlane.xlu0 %251 }
  0xb0   :  { %v246_v10 = vpop.xlane.xlu1 %245  ;;  %v261_v40 = vpop.xlane.xlu0 %260 }
  0xb4   :  { %v255_v11 = vpop.xlane.xlu1 %254 }
  0xb7   :  { %v194_v12 = vpop.xlane.xlu0 %193 }
  0xb8   :  { %v258_v15 = vpop.xlane.xlu1 %257  ;;  %v280_v29 = vmul.f32 %v234_v63, %v194_v12  ;;  %v281_v32 = vmul.f32 %v237_v3, %v194_v12 }
  0xba   :  { %v296_v38 = vmax.f32 %v280_v29, 1e-16  ;;  %v297_v42 = vmax.f32 %v281_v32, 1e-16 }
  0xbb   :  { %v197_v35 = vpop.xlane.xlu0 %196 }
  0xbc   :  { %v203_v17 = vpop.xlane.xlu1 %202  ;;  %v282_v36 = vmul.f32 %v240_v6, %v197_v35  ;;  %v283_v37 = vmul.f32 %v243_v5, %v197_v35  ;;  %472 = vrsqrt.f32 %v296_v38 }
  0xbd   :  { %v286_v39 = vmul.f32 %v252_v9, %v203_v17  ;;  %v287_v44 = vmul.f32 %v255_v11, %v203_v17  ;;  %474 = vrsqrt.f32 %v297_v42 }
  0xbe   :  { %v298_v47 = vmax.f32 %v282_v36, 1e-16  ;;  %v299_v50 = vmax.f32 %v283_v37, 1e-16 }
  0xbf   :  { %v200_v19 = vpop.xlane.xlu0 %199  ;;  %v302_v52 = vmax.f32 %v286_v39, 1e-16  ;;  %v303_v55 = vmax.f32 %v287_v44, 1e-16 }
  0xc0   :  { %v209_v21 = vpop.xlane.xlu1 %208  ;;  %v284_v49 = vmul.f32 %v246_v10, %v200_v19  ;;  %v285_v51 = vmul.f32 %v249_v4, %v200_v19  ;;  %476 = vrsqrt.f32 %v298_v47  ;;  %v363_v10 = vshrl.u32 %v360_v18, 7 }
  0xc1   :  { %478 = vrsqrt.f32 %v299_v50 }
  0xc2   :  { %v300_v8 = vmax.f32 %v284_v49, 1e-16  ;;  %v301_v1 = vmax.f32 %v285_v51, 1e-16  ;;  %480 = vrsqrt.f32 %v302_v52 }
  0xc3   :  { %v206_v23 = vpop.xlane.xlu0 %205  ;;  %482 = vrsqrt.f32 %v303_v55 }
  0xc4   :  { %v267_v24 = vpop.xlane.xlu1 %266  ;;  %v288_v53 = vmul.f32 %v258_v15, %v206_v23  ;;  %v289_v0 = vmul.f32 %v261_v40, %v206_v23  ;;  %484 = vrsqrt.f32 %v300_v8  ;;  %v366_v40 = vadd.s32 4294967288, %v361_v61 }
  0xc5   :  { %v291_v56 = vmul.f32 %v267_v24, %v209_v21  ;;  %486 = vrsqrt.f32 %v301_v1 }
  0xc6   :  { %v304_v7 = vmax.f32 %v288_v53, 1e-16  ;;  %v305_v13 = vmax.f32 %v289_v0, 1e-16  ;;  %v473_v54 = vpop.eup %472  ;;  %v768_v23 = vsub.s32 %v366_v40, %v363_v10 }
  0xc7   :  { %v264_v25 = vpop.xlane.xlu0 %263  ;;  %v307_v27 = vmax.f32 %v291_v56, 1e-16  ;;  %v475_v43 = vpop.eup %474 }
  0xc8   :  { %v270_v26 = vpop.xlane.xlu1 %269  ;;  %v290_v20 = vmul.f32 %v264_v25, %v209_v21  ;;  %488 = vrsqrt.f32 %v304_v7 }
  0xc9   :  { %490 = vrsqrt.f32 %v305_v13 }
  0xca   :  { %v306_v45 = vmax.f32 %v290_v20, 1e-16  ;;  %492 = vrsqrt.f32 %v307_v27  ;;  %v477_v63 = vpop.eup %476 }
  0xcb   :  { %v212_v28 = vpop.xlane.xlu0 %211  ;;  %v479_v3 = vpop.eup %478 }
  0xcc   :  { %v215_v30 = vpop.xlane.xlu1 %214  ;;  %v292_v22 = vmul.f32 %v270_v26, %v212_v28  ;;  %494 = vrsqrt.f32 %v306_v45  ;;  %v481_v5 = vpop.eup %480 }
  0xcd   :  { %v483_v11 = vpop.eup %482 }
  0xce   :  { %v308_v62 = vmax.f32 %v292_v22, 1e-16  ;;  %v485_v15 = vpop.eup %484 }
  0xcf   :  { %v273_v33 = vpop.xlane.xlu0 %272  ;;  %v487_v17 = vpop.eup %486 }
  0xd0   :  { %v279_v41 = vpop.xlane.xlu1 %278  ;;  %v293_v58 = vmul.f32 %v273_v33, %v212_v28  ;;  %v770_v28 = vsub.s32 %v361_v61, %v363_v10 }
  0xd1   :  { %v295_v48 = vmul.f32 %v279_v41, %v215_v30 }
  0xd2   :  { %v309_v60 = vmax.f32 %v293_v58, 1e-16  ;;  %v489_v21 = vpop.eup %488 }
  0xd3   :  { %v276_v46 = vpop.xlane.xlu0 %275  ;;  %v311_v9 = vmax.f32 %v295_v48, 1e-16  ;;  %v491_v26 = vpop.eup %490 }
  0xd4   :  { %v766_v2 = vpop.xlane.xlu1 %140  ;;  %v294_v14 = vmul.f32 %v276_v46, %v215_v30  ;;  %496 = vrsqrt.f32 %v309_v60  ;;  %v493_v32 = vpop.eup %492 }
  0xd5   :  { %498 = vrsqrt.f32 %v308_v62  ;;  %v329_v33 = vmul.f32 %v475_v43, %v766_v2 }
  0xd6   :  { %v310_v12 = vmax.f32 %v294_v14, 1e-16  ;;  %500 = vrsqrt.f32 %v311_v9  ;;  %v495_v41 = vpop.eup %494 }
  0xd7   :  { %v138_v16 = vpop.xlane.xlu0 %137  ;;  %v370_v55 = vrot.slane %v329_v33, %v768_v23 }
  0xd8   :  { %v147_v57 = vpop.xlane.xlu1 %146  ;;  %502 = vrsqrt.f32 %v310_v12  ;;  %v328_v36 = vmul.f32 %v473_v54, %v138_v16 }
  0xd9   :  { %v331_v24 = vmul.f32 %v479_v3, %v147_v57 }
  0xda   :  { %v365_v0 = vrot.slane %v328_v36, %v770_v28 }
  0xdb   :  { %v144_v31 = vpop.xlane.xlu0 %143  ;;  %v380_v47 = vrot.slane %v331_v24, %v768_v23 }
  0xdc   :  { %v153_v59 = vpop.xlane.xlu1 %152  ;;  %v330_v25 = vmul.f32 %v477_v63, %v144_v31 }
  0xdd   :  { %v333_v29 = vmul.f32 %v487_v17, %v153_v59 }
  0xde   :  { %v376_v49 = vrot.slane %v330_v25, %v770_v28  ;;  %v497_v2 = vpop.eup %496 }
  0xdf   :  { %v150_v34 = vpop.xlane.xlu0 %149  ;;  %v389_v52 = vrot.slane %v333_v29, %v768_v23  ;;  %v499_v1 = vpop.eup %498 }
  0xe0   :  { %v159_v6 = vpop.xlane.xlu1 %158  ;;  %v332_v30 = vmul.f32 %v485_v15, %v150_v34  ;;  %v381_v31 = vsel %vm371_vm1, %v380_v47, %v376_v49  ;;  %v501_v59 = vpop.eup %500  ;;  %v372_v34 = vsel %vm371_vm1, %v370_v55, %v365_v0 }
  0xe1   :  { %v335_v37 = vmul.f32 %v483_v11, %v159_v6  ;;  %v437_v43 = vsel %vm436_vm2, %v381_v31, %v372_v34 }
  0xe2   :  { %v385_v53 = vrot.slane %v332_v30, %v770_v28  ;;  %v503_v61 = vpop.eup %502 }
  0xe3   :  { %v156_v4 = vpop.xlane.xlu0 %155  ;;  %v398_v16 = vrot.slane %v335_v37, %v768_v23 }
  0xe4   :  { %v165_v35 = vpop.xlane.xlu1 %164  ;;  %v334_v38 = vmul.f32 %v481_v5, %v156_v4  ;;  %v390_v45 = vsel %vm371_vm1, %v389_v52, %v385_v53 }
  0xe5   :  { %v337_v42 = vmul.f32 %v491_v26, %v165_v35  ;;  %v439_v6 = vsel %vm438_vm3, %v390_v45, %v437_v43 }
  0xe6   :  { %v394_v8 = vrot.slane %v334_v38, %v770_v28 }
  0xe7   :  { %v162_v19 = vpop.xlane.xlu0 %161  ;;  %v407_v20 = vrot.slane %v337_v42, %v768_v23 }
  0xe8   :  { %v171_v39 = vpop.xlane.xlu1 %170  ;;  %v336_v44 = vmul.f32 %v489_v21, %v162_v19  ;;  %v399_v54 = vsel %vm371_vm1, %v398_v16, %v394_v8 }
  0xe9   :  { %v339_v50 = vmul.f32 %v493_v32, %v171_v39  ;;  %v441_v5 = vsel %vm440_vm4, %v399_v54, %v439_v6 }
  0xea   :  { %v403_v7 = vrot.slane %v336_v44, %v770_v28 }
  0xeb   :  { %v168_v46 = vpop.xlane.xlu0 %167  ;;  %v416_v27 = vrot.slane %v339_v50, %v768_v23 }
  0xec   :  { %v338_v51 = vmul.f32 %v495_v41, %v168_v46  ;;  %v177_v56 = vpop.xlane.xlu1 %176  ;;  %v408_v62 = vsel %vm371_vm1, %v407_v20, %v403_v7 }
  0xed   :  { %v341_v57 = vmul.f32 %v497_v2, %v177_v56  ;;  %v443_v40 = vsel %vm442_vm5, %v408_v62, %v441_v5 }
  0xee   :  { %v412_v58 = vrot.slane %v338_v51, %v770_v28 }
  0xef   :  { %v174_v13 = vpop.xlane.xlu0 %173  ;;  %v425_v22 = vrot.slane %v341_v57, %v768_v23 }
  0xf0   :  { %v340_v18 = vmul.f32 %v499_v1, %v174_v13  ;;  %v183_v48 = vpop.xlane.xlu1 %182  ;;  %v417_v3 = vsel %vm371_vm1, %v416_v27, %v412_v58 }
  0xf1   :  { %v343_v14 = vmul.f32 %v501_v59, %v183_v48  ;;  %v445_v12 = vsel %vm444_vm6, %v417_v3, %v443_v40 }
  0xf2   :  { %v421_v60 = vrot.slane %v340_v18, %v770_v28 }
  0xf3   :  { %v180_v63 = vpop.xlane.xlu0 %179  ;;  %v434_v10 = vrot.slane %v343_v14, %v768_v23 }
  0xf4   :  { %v342_v4 = vmul.f32 %v503_v61, %v180_v63  ;;  %v426_v9 = vsel %vm371_vm1, %v425_v22, %v421_v60 }
  0xf5   :  { %v447_v35 = vsel %vm446_vm7, %v426_v9, %v445_v12 }
  0xf6   :  { %v430_v11 = vrot.slane %v342_v4, %v770_v28 }
  0xf8   :  { %v435_v15 = vsel %vm371_vm1, %v434_v10, %v430_v11 }
  0xf9   :  { %v449_v17 = vsel %vm448_vm8, %v435_v15, %v447_v35 }
  0xfa   :  { %452 = vst.msk [vmem:[#allocation5] sm:$0xff] %vm451_vm9, %v449_v17 }
  0xfb   :  { %537 = shalt.err (!%p534_p12)
}
  0xfc   :  { %s538_s24 = scalar_lea.hbm %s811_s1, 128 }
  0xfd   :  { %p539_p13 = scmp.ne.s32.totalorder %s811_s1, %s538_s24  ;;  %p542_p0 = scmp.lt.u32.totalorder %s538_s24, %s811_s1 }
  0xff   :  { %p544_p1 = pnand %p542_p0, %p539_p13 }
 0x101   :  { %547 = shalt.err (!%p544_p1)
}
 0x102   :  { %462 = dma.vmem_to_hbm [thread:$0]  %s460_s20, 128, %s811_s1, [#allocation4]  }
 0x103   :  { %550 = dma.done.wait [#allocation4], 128  }
 0x104   :  { %551 = vsyncadd [#allocation4], 4294967168 }
 0x105   :  { %466 = vsyncpa [#allocation3], 1 }
 0x106   :  { %467 = vsyncpa [#allocation4], 1 }

</bundles_post_ra>
